<compile_context>
chip_gen: v7x
topology: tpu7x:2x2x1
jax: 0.10.0
libtpu: 0.0.40
codegen_flags: <defaults>
</compile_context>

<pallas_src>
import functools

import jax
import jax.numpy as jnp
from jax.experimental import pallas as pl
from jax.experimental.pallas import tpu as pltpu


def _round_up(x, m):
    return (x + m - 1) // m * m


def _choose_bm(batch, block_m):
    """Batch tile: multiple of 8, and >= 2 grid steps whenever B > 8 so the
    parallel axis shards across both TensorCores on v7x."""
    if batch <= 8:
        return 8
    bm = min(block_m, _round_up(pl.cdiv(batch, 2), 8))
    return max(8, bm)


def _vmem_limit_bytes(bm, d_in, hidden, d_out, x_isize, w_isize, out_isize):
    x_tiles = 2 * bm * d_in * x_isize              # double-buffered x tile
    weights = (d_in * hidden + hidden * d_out) * w_isize   # resident weights
    biases = (hidden + d_out) * 4
    out_tiles = 2 * bm * d_out * out_isize
    h_interm = bm * hidden * 4                     # f32 hidden activations
    total = x_tiles + weights + biases + out_tiles + h_interm
    total = int(total * 1.3) + (2 << 20)           # ~30% + 2 MiB headroom
    return min(max(total, 16 << 20), 48 << 20)


def projection_head_kernel(x_ref, w1_ref, b1_ref, w2_ref, b2_ref, o_ref,
                           *, matmul_dtype):
    x = x_ref[...]
    if x.dtype != matmul_dtype:
        x = x.astype(matmul_dtype)        # VPU cast, hidden under the MXU
    # First linear: [bm, Din] @ [Din, 512] -> f32 accumulation.
    h = jnp.dot(x, w1_ref[...], preferred_element_type=jnp.float32)
    h = h + b1_ref[...]                   # bias add in f32
    h = jnp.maximum(h, 0.1 * h)           # LeakyReLU(0.1): mul + max
    # Second linear: [bm, 512] @ [512, Dout] -> f32 accumulation.
    out = jnp.dot(h.astype(matmul_dtype), w2_ref[...],
                  preferred_element_type=jnp.float32)
    out = out + b2_ref[...]
    o_ref[...] = out.astype(o_ref.dtype)


def prepare_params(w1, b1, w2, b2, matmul_dtype=jnp.bfloat16):
    """One-time cast of weights to the MXU dtype / biases to f32 so the per-call
    path does no weight preprocessing."""
    return (w1.astype(matmul_dtype), b1.astype(jnp.float32),
            w2.astype(matmul_dtype), b2.astype(jnp.float32))


def projection_head(x, w1, b1, w2, b2, *, block_m=512,
                    matmul_dtype=jnp.bfloat16):
    """Fused ProjectionHead forward.

    x:  [B, input_dim]
    w1: [input_dim, 512],  b1: [512]
    w2: [512, output_dim], b2: [output_dim]
    returns [B, output_dim] in x.dtype
    """
    B, d_in = x.shape
    hidden = w1.shape[1]
    d_out = w2.shape[1]
    out_dtype = x.dtype

    # Weights/biases: only cast if the caller didn't pre-cast (prepare_params).
    w1c = w1 if w1.dtype == matmul_dtype else w1.astype(matmul_dtype)
    w2c = w2 if w2.dtype == matmul_dtype else w2.astype(matmul_dtype)
    b1_2d = b1.reshape(1, hidden).astype(jnp.float32)
    b2_2d = b2.reshape(1, d_out).astype(jnp.float32)

    bm = _choose_bm(B, block_m)
    grid = (pl.cdiv(B, bm),)

    rows = grid[0] * bm
    flops = 2 * rows * (d_in * hidden + hidden * d_out)
    bytes_accessed = (
        B * d_in * jnp.dtype(x.dtype).itemsize
        + w1c.size * jnp.dtype(w1c.dtype).itemsize
        + w2c.size * jnp.dtype(w2c.dtype).itemsize
        + (hidden + d_out) * 4
        + B * d_out * jnp.dtype(out_dtype).itemsize)

    vmem_limit = _vmem_limit_bytes(
        bm, d_in, hidden, d_out,
        jnp.dtype(x.dtype).itemsize,
        jnp.dtype(matmul_dtype).itemsize,
        jnp.dtype(out_dtype).itemsize)

    # Weights / biases never change across the grid -> single-buffer them.
    const_mode = pl.Buffered(1)

    kernel = functools.partial(projection_head_kernel,
                               matmul_dtype=matmul_dtype)

    out = pl.pallas_call(
        kernel,
        out_shape=jax.ShapeDtypeStruct((B, d_out), out_dtype),
        grid_spec=pltpu.PrefetchScalarGridSpec(
            num_scalar_prefetch=0,
            grid=grid,
            in_specs=[
                pl.BlockSpec((bm, d_in), lambda i: (i, 0)),           # x tile
                pl.BlockSpec((d_in, hidden), lambda i: (0, 0),
                             pipeline_mode=const_mode),               # W1 (resident)
                pl.BlockSpec((1, hidden), lambda i: (0, 0),
                             pipeline_mode=const_mode),               # b1
                pl.BlockSpec((hidden, d_out), lambda i: (0, 0),
                             pipeline_mode=const_mode),               # W2 (resident)
                pl.BlockSpec((1, d_out), lambda i: (0, 0),
                             pipeline_mode=const_mode),               # b2
            ],
            out_specs=pl.BlockSpec((bm, d_out), lambda i: (i, 0)),
        ),
        compiler_params=pltpu.CompilerParams(
            dimension_semantics=("parallel",),
            vmem_limit_bytes=vmem_limit),
        cost_estimate=pl.CostEstimate(
            flops=flops, transcendentals=0, bytes_accessed=bytes_accessed),
    )(x, w1c, b1_2d, w2c, b2_2d)

    return out


def init_params(key, input_dim, hidden_dim=512, output_dim=256,
                dtype=jnp.float32):
    """Deterministic init mimicking nn.Linear default U(-1/sqrt(fan_in), ...)."""
    k1, k2, k3, k4 = jax.random.split(key, 4)
    bound1 = 1.0 / jnp.sqrt(input_dim)
    bound2 = 1.0 / jnp.sqrt(hidden_dim)
    w1 = jax.random.uniform(k1, (input_dim, hidden_dim), dtype,
                            minval=-bound1, maxval=bound1)
    b1 = jax.random.uniform(k2, (hidden_dim,), dtype,
                            minval=-bound1, maxval=bound1)
    w2 = jax.random.uniform(k3, (hidden_dim, output_dim), dtype,
                            minval=-bound2, maxval=bound2)
    b2 = jax.random.uniform(k4, (output_dim,), dtype,
                            minval=-bound2, maxval=bound2)
    return w1, b1, w2, b2


def reference_forward(x, w1, b1, w2, b2, matmul_dtype=None):
    """Pure-JAX reference. If matmul_dtype is set, matmul inputs are cast like
    the kernel does (f32 accumulation either way)."""
    if matmul_dtype is not None:
        xm, w1m, w2m = (x.astype(matmul_dtype), w1.astype(matmul_dtype),
                        w2.astype(matmul_dtype))
    else:
        xm, w1m, w2m = x, w1, w2
    h = jnp.dot(xm, w1m, preferred_element_type=jnp.float32) + b1
    h = jnp.maximum(h, 0.1 * h)
    hm = h.astype(matmul_dtype) if matmul_dtype is not None else h
    return jnp.dot(hm, w2m, preferred_element_type=jnp.float32) + b2


if __name__ == "__main__":
    key = jax.random.PRNGKey(0)
    kx, kp = jax.random.split(key)

    batch = 16
    input_dim = 64       # small embedding dim for the synthetic test
    output_dim = 256

    x = jax.random.normal(kx, (batch, input_dim), jnp.float32)
    w1, b1, w2, b2 = init_params(kp, input_dim, 512, output_dim)
    # One-time weight cast (outside the per-call path).
    w1c, b1c, w2c, b2c = prepare_params(w1, b1, w2, b2)

    out = jax.block_until_ready(projection_head(x, w1c, b1c, w2c, b2c))
    assert out.shape == (batch, output_dim), out.shape

    # Check against a reference that casts matmul operands the same way.
    ref_bf16 = reference_forward(x, w1, b1, w2, b2, matmul_dtype=jnp.bfloat16)
    assert jnp.allclose(out, ref_bf16, atol=2e-3, rtol=2e-3), \
        float(jnp.max(jnp.abs(out - ref_bf16)))

    # Loose sanity check against the full-f32 reference (bf16 rounding only).
    ref_f32 = reference_forward(x, w1, b1, w2, b2)
    assert jnp.allclose(out, ref_f32, atol=5e-2, rtol=5e-2), \
        float(jnp.max(jnp.abs(out - ref_f32)))

    # Ragged batch path (B not a multiple of 8 / of bm): last block is masked.
    x2 = jax.random.normal(jax.random.PRNGKey(1), (10, input_dim), jnp.float32)
    out2 = jax.block_until_ready(projection_head(x2, w1c, b1c, w2c, b2c))
    ref2 = reference_forward(x2, w1, b1, w2, b2, matmul_dtype=jnp.bfloat16)
    assert out2.shape == (10, output_dim), out2.shape
    assert jnp.allclose(out2, ref2, atol=2e-3, rtol=2e-3), \
        float(jnp.max(jnp.abs(out2 - ref2)))

    # Tiny batch (single grid step) still works.
    x3 = jax.random.normal(jax.random.PRNGKey(2), (3, input_dim), jnp.float32)
    out3 = jax.block_until_ready(projection_head(x3, w1c, b1c, w2c, b2c))
    ref3 = reference_forward(x3, w1, b1, w2, b2, matmul_dtype=jnp.bfloat16)
    assert out3.shape == (3, output_dim), out3.shape
    assert jnp.allclose(out3, ref3, atol=2e-3, rtol=2e-3), \
        float(jnp.max(jnp.abs(out3 - ref3)))

    print("KERNEL_OK")
</pallas_src>

<mosaic_0001>
module attributes {stable_mosaic.version = 11 : i64} {
  func.func @projection_head_kernel(%arg0: i32, %arg1: memref<8x64xf32, #tpu.memory_space<vmem>>, %arg2: memref<64x512xbf16, #tpu.memory_space<vmem>>, %arg3: memref<1x512xf32, #tpu.memory_space<vmem>>, %arg4: memref<512x256xbf16, #tpu.memory_space<vmem>>, %arg5: memref<1x256xf32, #tpu.memory_space<vmem>>, %arg6: memref<8x256xf32, #tpu.memory_space<vmem>>) attributes {dimension_semantics = [#tpu.dimension_semantics<parallel>], iteration_bounds = array<i64: 2>, scalar_prefetch = 0 : i64, scratch_operands = 0 : i64, tpu.core_type = #tpu.core_type<tc>, window_params = [{transform_indices = @transform_0, window_bounds = array<i64: 8, 64>}, {pipeline_mode = #tpu.pipeline_mode<synchronous>, transform_indices = @transform_1, window_bounds = array<i64: 64, 512>}, {pipeline_mode = #tpu.pipeline_mode<synchronous>, transform_indices = @transform_2, window_bounds = array<i64: 1, 512>}, {pipeline_mode = #tpu.pipeline_mode<synchronous>, transform_indices = @transform_3, window_bounds = array<i64: 512, 256>}, {pipeline_mode = #tpu.pipeline_mode<synchronous>, transform_indices = @transform_4, window_bounds = array<i64: 1, 256>}, {transform_indices = @transform_5, window_bounds = array<i64: 8, 256>}]} {
    %c0 = arith.constant 0 : index
    %c0_0 = arith.constant 0 : index
    %0 = vector.load %arg1[%c0, %c0_0] : memref<8x64xf32, #tpu.memory_space<vmem>>, vector<8x64xf32>
    %1 = arith.truncf %0 : vector<8x64xf32> to vector<8x64xbf16>
    %c0_1 = arith.constant 0 : index
    %c0_2 = arith.constant 0 : index
    %2 = vector.load %arg2[%c0_1, %c0_2] : memref<64x512xbf16, #tpu.memory_space<vmem>>, vector<64x512xbf16>
    %cst = arith.constant dense<0.000000e+00> : vector<8x512xf32>
    %3 = tpu.matmul %1, %2, %cst {dimension_numbers = #tpu.dot_dimension_numbers<[1], [0], [0], [1], [0, 0, 1, 1], [], []>} : vector<8x64xbf16>, vector<64x512xbf16>, vector<8x512xf32> -> vector<8x512xf32>
    %c0_3 = arith.constant 0 : index
    %c0_4 = arith.constant 0 : index
    %4 = vector.load %arg3[%c0_3, %c0_4] : memref<1x512xf32, #tpu.memory_space<vmem>>, vector<1x512xf32>
    %5 = vector.broadcast %4 : vector<1x512xf32> to vector<8x512xf32>
    %6 = arith.addf %3, %5 : vector<8x512xf32>
    %cst_5 = arith.constant 1.000000e-01 : f32
    %7 = vector.broadcast %cst_5 : f32 to vector<8x512xf32>
    %8 = arith.mulf %7, %6 : vector<8x512xf32>
    %9 = arith.maximumf %6, %8 : vector<8x512xf32>
    %10 = arith.truncf %9 : vector<8x512xf32> to vector<8x512xbf16>
    %c0_6 = arith.constant 0 : index
    %c0_7 = arith.constant 0 : index
    %11 = vector.load %arg4[%c0_6, %c0_7] : memref<512x256xbf16, #tpu.memory_space<vmem>>, vector<512x256xbf16>
    %cst_8 = arith.constant dense<0.000000e+00> : vector<8x256xf32>
    %12 = tpu.matmul %10, %11, %cst_8 {dimension_numbers = #tpu.dot_dimension_numbers<[1], [0], [0], [1], [0, 0, 1, 1], [], []>} : vector<8x512xbf16>, vector<512x256xbf16>, vector<8x256xf32> -> vector<8x256xf32>
    %c0_9 = arith.constant 0 : index
    %c0_10 = arith.constant 0 : index
    %13 = vector.load %arg5[%c0_9, %c0_10] : memref<1x256xf32, #tpu.memory_space<vmem>>, vector<1x256xf32>
    %14 = vector.broadcast %13 : vector<1x256xf32> to vector<8x256xf32>
    %15 = arith.addf %12, %14 : vector<8x256xf32>
    %c0_11 = arith.constant 0 : index
    %c0_12 = arith.constant 0 : index
    %16 = vector.load %arg6[%c0_11, %c0_12] : memref<8x256xf32, #tpu.memory_space<vmem>>, vector<8x256xf32>
    tpu.vector_store %arg6[%c0_11, %c0_12], %15 {strides = array<i32>} : memref<8x256xf32, #tpu.memory_space<vmem>>, vector<8x256xf32>,
    return
  }
  func.func @transform_0(%arg0: i32) -> (i32, i32) {
    %c0_i32 = arith.constant 0 : i32
    %c0_i32_0 = arith.constant 0 : i32
    return %arg0, %c0_i32 : i32, i32
  }
  func.func @transform_1(%arg0: i32) -> (i32, i32) {
    %c0_i32 = arith.constant 0 : i32
    %c0_i32_0 = arith.constant 0 : i32
    %c0_i32_1 = arith.constant 0 : i32
    return %c0_i32, %c0_i32_0 : i32, i32
  }
  func.func @transform_2(%arg0: i32) -> (i32, i32) {
    %c0_i32 = arith.constant 0 : i32
    %c0_i32_0 = arith.constant 0 : i32
    %c0_i32_1 = arith.constant 0 : i32
    return %c0_i32, %c0_i32_0 : i32, i32
  }
  func.func @transform_3(%arg0: i32) -> (i32, i32) {
    %c0_i32 = arith.constant 0 : i32
    %c0_i32_0 = arith.constant 0 : i32
    %c0_i32_1 = arith.constant 0 : i32
    return %c0_i32, %c0_i32_0 : i32, i32
  }
  func.func @transform_4(%arg0: i32) -> (i32, i32) {
    %c0_i32 = arith.constant 0 : i32
    %c0_i32_0 = arith.constant 0 : i32
    %c0_i32_1 = arith.constant 0 : i32
    return %c0_i32, %c0_i32_0 : i32, i32
  }
  func.func @transform_5(%arg0: i32) -> (i32, i32) {
    %c0_i32 = arith.constant 0 : i32
    %c0_i32_0 = arith.constant 0 : i32
    return %arg0, %c0_i32 : i32, i32
  }
}

</mosaic_0001>

<bundles_post_ra>
// kernel: tpu_custom_call.1
= control target key start
LH: loop header
LB: loop body
LE: loop exit
PB: predicated region body
PF: predicated region fallthrough
CT: control target
= control target key end

     0   :  { %10 = vsyncpa [#allocation3], 0  ;;  %s1804_s0 = inlined_call_operand.hbm [shape: f32[16,64], index: 0, kind: input, shape index: {}]   ;;  %s1805_s1 = inlined_call_operand.hbm [shape: bf16[64,512], index: 1, kind: input, shape index: {}]   ;;  %s1806_s2 = inlined_call_operand.vmem [shape: f32[1,512], index: 2, kind: input, shape index: {}]   ;;  %s1807_s3 = inlined_call_operand.hbm [shape: bf16[512,256], index: 3, kind: input, shape index: {}]   ;;  %s1808_s4 = inlined_call_operand.vmem [shape: f32[1,256], index: 4, kind: input, shape index: {}]   ;;  %s1809_s5 = inlined_call_operand.hbm [shape: f32[16,256], index: 5, kind: output, shape index: {}]  }
   0x1   :  { %12 = vsyncpa [#allocation3 + $0x1], 0 }
   0x2   :  { %13 = vsyncpa [#allocation6], 0 }
   0x3   :  { %14 = vsyncpa [#allocation4], 0 }
   0x4   :  { %16 = vsyncpa [#allocation4 + $0x1], 0  ;;  %s1565_s18 = smov 0   ;;  %s1567_s19 = smov 0  }
   0x5   :  { %s1569_s20 = smov 0   ;;  %s1571_s21 = smov 0  }
   0x6 LB: > { %s1586_s22 = sadd.s32 4294967295, %s1524_s21   ;;  %s1072_s23 = sadd.s32 4294967294, %s1524_s21   ;;  %s1524_s21 = sphi %s1571_s21, %s1829_s21   ;;  %s1520_s20 = sphi %s1569_s20, %s1828_s20   ;;  %s1516_s19 = sphi %s1567_s19, %s1827_s19   ;;  %s1512_s18 = sphi %s1565_s18, %s1826_s18  }
   0x7   : > { %p42_p0 = scmp.ne.s32.totalorder %s1516_s19, %s1512_s18  ;;  %p1810_p1 = scmp.eq.s32.totalorder %s1586_s22, 0 }
   0x8   : > { %p156_p3 = scmp.eq.s32.totalorder %s1072_s23, 1  ;;  %p1073_p5 = scmp.ge.s32.totalorder %s1524_s21, 1 }
   0x9   : > { %p1595_p4 = por %p1810_p1, %p42_p0  ;;  %p163_p7 = scmp.lt.s32.totalorder %s1524_s21, 3 }
   0xa   : > { %p1600_p6 = por %p156_p3, %p42_p0  ;;  %s1526_s27 = smov [#allocation5]  }
   0xb   : > { %s1813_s24 = scalar_select %p1595_p4, 1, 0 }
   0xc   : > { %s1814_s25 = scalar_select %p1600_p6, 1, 0 }
   0xd   : > { %p1605_p8 = pnand %p1073_p5, %p163_p7  ;;  %s175_s28 = sshll.u32 %s1526_s27, 4  ;;  %s1609_s28 = int_to_ptr.vmem [resolvable:$true] %s175_s28 }
   0xe   : > { %s1527_s30 = smov [#allocation7]   ;;  %s1368_s9 = scalar_lea.hbm %s1805_s1, 2048 }
   0xf   : > { %p1188_p9 = pneg %p1605_p8  ;;  %s191_s6 = sshll.u32 %s1527_s30, 4  ;;  %s1620_s6 = int_to_ptr.vmem [resolvable:$true] %s191_s6 }
  0x10   : > { %p1369_p12 = scmp.ne.s32.totalorder %s1805_s1, %s1368_s9  ;;  %p1375_p5 = scmp.lt.u32.totalorder %s1368_s9, %s1805_s1 }
  0x11   : > { %p1616_p11 = pnand %p1188_p9, %p1810_p1 }
  0x13   : > { %p1370_p13 = pneg %p1616_p11 }
  0x15   : > { %p1371_p0 = pnand %p1370_p13, %p1369_p12 }
  0x17   : > { %p1372_p3 = pneg %p1371_p0 }
  0x19   : > { %p1377_p7 = pnand %p1375_p5, %p1372_p3 }
  0x1b   : > { %1380 = shalt.err (!%p1377_p7)
}
  0x1c   : > { %s1381_s14 = scalar_lea.vmem %s1609_s28, 2048  ;;  %p1389_p2 = scmp.lt.s32.totalorder %s1609_s28, %s1609_s28 }
  0x1d   : > { %p1382_p9 = scmp.ne.s32.totalorder %s1609_s28, %s1381_s14  ;;  %p1390_p12 = scmp.lt.s32.totalorder %s1381_s14, %s1381_s14 }
  0x1f   : > { %p1384_p10 = pnand %p1382_p9, %p1370_p13  ;;  %p1391_p0 = por %p1390_p12, %p1389_p2 }
  0x21   : > { %p1385_p1 = pneg %p1384_p10 }
  0x23   : > { %p1392_p6 = pnand %p1391_p0, %p1385_p1 }
  0x25   : > { %1395 = shalt.err (!%p1392_p6)
}
  0x26   : > { %s1528_s15 = smov 256   ;;  %s1529_s16 = smov 16  }
  0x27   : > { %1191 = dma.hbm_to_vmem [thread:$0]  (!%p1616_p11), %s1805_s1, 2048, %s1609_s28, [#allocation6], %s1528_s15, %s1528_s15, %s1529_s16  }
  0x28   : > { %s1396_s7 = scalar_lea.hbm %s1807_s3, 8192 }
  0x29   : > { %p1397_p2 = scmp.ne.s32.totalorder %s1807_s3, %s1396_s7  ;;  %p1403_p10 = scmp.lt.u32.totalorder %s1396_s7, %s1807_s3 }
  0x2b   : > { %p1399_p1 = pnand %p1397_p2, %p1370_p13 }
  0x2d   : > { %p1400_p6 = pneg %p1399_p1 }
  0x2f   : > { %p1405_p3 = pnand %p1403_p10, %p1400_p6 }
  0x31   : > { %1408 = shalt.err (!%p1405_p3)
}
  0x32   : > { %s1409_s28 = scalar_lea.vmem %s1620_s6, 8192  ;;  %p1417_p12 = scmp.lt.s32.totalorder %s1620_s6, %s1620_s6 }
  0x33   : > { %p1410_p5 = scmp.ne.s32.totalorder %s1620_s6, %s1409_s28  ;;  %p1418_p0 = scmp.lt.s32.totalorder %s1409_s28, %s1409_s28 }
  0x35   : > { %p1412_p7 = pnand %p1410_p5, %p1370_p13  ;;  %p1419_p2 = por %p1418_p0, %p1417_p12 }
  0x37   : > { %p1413_p9 = pneg %p1412_p7 }
  0x39   : > { %p1420_p1 = pnand %p1419_p2, %p1413_p9 }
  0x3b   : > { %1423 = shalt.err (!%p1420_p1)
}
  0x3c   : > { %s1530_s12 = smov 128   ;;  %s1531_s13 = smov 8  }
  0x3d   : > { %1194 = dma.hbm_to_vmem [thread:$0]  (!%p1616_p11), %s1807_s3, 8192, %s1620_s6, [#allocation6], %s1530_s12, %s1530_s12, %s1531_s13  }
  0x3e   : > { %s1675_s16 = sadd.s32 1, %s1524_s21   ;;  %s29_s23 = sadd.s32 1, %s1520_s20 }
  0x3f   : > { %s26_s17 = ssub.s32 %s1524_s21, %s1675_s16  ;;  %p36_p6 = scmp.ne.s32.totalorder %s1520_s20, %s1516_s19 }
  0x40   : > { %p27_p13 = scmp.eq.s32.totalorder %s26_s17, 0  ;;  %p37_p10 = scmp.eq.s32.totalorder %s1524_s21, 0 }
  0x41   : > { %p1817_p5 = scmp.eq.s32.totalorder %s1586_s22, 1  ;;  %p1205_p9 = scmp.lt.s32.totalorder %s1524_s21, 2 }
  0x42   : > { %s1684_s27 = scalar_select %p27_p13, %s1520_s20, %s29_s23  }
  0x43   : > { %p38_p3 = por %p37_p10, %p36_p6  ;;  %p1688_p7 = por %p1817_p5, %p36_p6 }
  0x44   : > { %s208_s29 = sand.u32 1, %s1520_s20   ;;  %s1078_s6 = sshll.u32 %s1524_s21, 7 }
  0x45   : > { %s1818_s30 = scalar_select %p1688_p7, 1, 0 }
  0x46   : > { %s1077_s7 = sshll.u32 %s208_s29, 3  ;;  %s1698_s10 = scalar_lea.hbm %s1804_s0, %s1078_s6 }
  0x47   : > { %s212_s11 = scalar_lea.vmem [#allocation2], %s1077_s7  ;;  %p1702_p11 = pnand %p1205_p9, %p38_p3 }
  0x48   : > { %s219_s28 = sshll.u32 %s212_s11, 4  ;;  %s209_s13 = scalar_lea.sflag [#allocation3], %s208_s29  ;;  %s1700_s28 = int_to_ptr.vmem [resolvable:$true] %s219_s28 }
  0x49   : > { %s1424_s14 = scalar_lea.hbm %s1698_s10, 128  ;;  %p1426_p0 = pneg %p1702_p11 }
  0x4a   : > { %p1425_p12 = scmp.ne.s32.totalorder %s1698_s10, %s1424_s14  ;;  %s1429_s23 = scalar_lea.hbm %s1804_s0, 256 }
  0x4b   : > { %p1430_p13 = scmp.lt.u32.totalorder %s1698_s10, %s1804_s0  ;;  %p1431_p6 = scmp.lt.u32.totalorder %s1429_s23, %s1424_s14 }
  0x4c   : > { %p1427_p2 = pnand %p1426_p0, %p1425_p12  ;;  %p1433_p3 = scmp.lt.u32.totalorder %s1424_s14, %s1698_s10 }
  0x4d   : > { %p1432_p10 = por %p1431_p6, %p1430_p13 }
  0x4e   : > { %p1428_p1 = pneg %p1427_p2 }
  0x4f   : > { %p1434_p5 = por %p1433_p3, %p1432_p10 }
  0x51   : > { %p1435_p9 = pnand %p1434_p5, %p1428_p1 }
  0x53   : > { %1438 = shalt.err (!%p1435_p9)
}
  0x54   : > { %s1439_s29 = scalar_lea.vmem %s1700_s28, 128  ;;  %s1532_s8 = smov [#allocation2]  }
  0x55   : > { %p1440_p12 = scmp.ne.s32.totalorder %s1700_s28, %s1439_s29  ;;  %s1444_s9 = sshll.u32 %s1532_s8, 4  ;;  %s1445_s9 = int_to_ptr.vmem [resolvable:$false] %s1444_s9 }
  0x56   : > { %s1446_s11 = scalar_lea.vmem %s1445_s9, 256  ;;  %p1447_p4 = scmp.lt.s32.totalorder %s1700_s28, %s1445_s9 }
  0x57   : > { %p1442_p2 = pnand %p1440_p12, %p1426_p0  ;;  %p1448_p13 = scmp.lt.s32.totalorder %s1446_s11, %s1439_s29 }
  0x59   : > { %p1443_p7 = pneg %p1442_p2  ;;  %p1449_p6 = por %p1448_p13, %p1447_p4 }
  0x5b   : > { %p1450_p10 = pnand %p1449_p6, %p1443_p7 }
  0x5d   : > { %1453 = shalt.err (!%p1450_p10)
}
  0x5e   : > { %1198 = dma.hbm_to_vmem [thread:$0]  (!%p1702_p11), %s1698_s10, 128, %s1700_s28, %s209_s13  }
  0x5f   : > { %228 = sbr.rel (%p1605_p8) target bundleno = 577 (0x241), region = 40  ;;  %s1734_s14 = sand.u32 (!%p1605_p8), 1, %s1516_s19  }
  0x60   : > { %s1080_s15 = sshll.u32 (!%p1605_p8), %s1734_s14, 3  ;;  %s231_s17 = scalar_lea.sflag (!%p1605_p8), [#allocation3], %s1734_s14 }
  0x61   : > { %s1738_s23 = scalar_lea.vmem (!%p1605_p8), [#allocation2], %s1080_s15  ;;  %p1820_p4 = scmp.ne.s32.totalorder (!%p1605_p8), %s1813_s24, 0 }
  0x66   : > { %1499 = dma.done.wait (%p1820_p4), %s231_s17, 128  }
  0x67   : > { %1501 = vsyncadd (%p1820_p4), %s231_s17, 4294967168  ;;  %p1821_p7 = scmp.eq.s32.totalorder %s1586_s22, 0 }
  0x69   : > { %1503 = dma.done.wait (%p1821_p7), [#allocation6], 10240   ;;  %p1822_p8 = pmov %p1821_p7 }
  0x6a   : > { %v1533_v0 = vmov 0   ;;  %v1248_v1 = vld [vmem:[#allocation5 + $0x4] ss:$16 sps:$4 sm:$0xff]   ;;  %v1250_v2 = vld [vmem:[#allocation5 + $0xc] ss:$16 sps:$4 sm:$0xff]   ;;  %vm390_vm0 = vcmask 523264  }
  0x6b   : > { %1505 = vsyncadd (%p1822_p8), [#allocation6], 4294957056  ;;  %426 = vmatprep.mubr.bf16.mxu0 %v1533_v0  ;;  %467 = vmatprep.mubr.bf16.mxu1 %v1533_v0  ;;  %v1252_v3 = vld [vmem:[#allocation5] ss:$16 sps:$4 sm:$0xff]   ;;  %v1253_v4 = vld [vmem:[#allocation5 + $0x8] ss:$16 sps:$4 sm:$0xff]  }
  0x6c   : > { %394 = vmatprep.subr.bf16.mxu0 %v1248_v1  ;;  %435 = vmatprep.subr.bf16.mxu1 %v1250_v2  ;;  %v1254_v5 = vld [vmem:[#allocation5 + $0x24] ss:$16 sps:$4 sm:$0xff]   ;;  %v1256_v6 = vld [vmem:[#allocation5 + $0x2c] ss:$16 sps:$4 sm:$0xff]   ;;  %v1258_v7 = vld [vmem:[#allocation5 + $0x20] ss:$16 sps:$4 sm:$0xff]  }
  0x6d   : > { %395 = vmatpush1.bf16.msra.mxu0 %v1252_v3  ;;  %436 = vmatpush1.bf16.msra.mxu1 %v1253_v4  ;;  %v1259_v8 = vld [vmem:[#allocation5 + $0x28] ss:$16 sps:$4 sm:$0xff]   ;;  %v1260_v9 = vld [vmem:[#allocation5 + $0x44] ss:$16 sps:$4 sm:$0xff]   ;;  %v1262_v10 = vld [vmem:[#allocation5 + $0x4c] ss:$16 sps:$4 sm:$0xff]  }
  0x6e   : > { %396 = vmatprep.subr.bf16.mxu0 %v1254_v5  ;;  %437 = vmatprep.subr.bf16.mxu1 %v1256_v6  ;;  %v1264_v11 = vld [vmem:[#allocation5 + $0x40] ss:$16 sps:$4 sm:$0xff]   ;;  %v1265_v12 = vld [vmem:[#allocation5 + $0x48] ss:$16 sps:$4 sm:$0xff]   ;;  %v1266_v13 = vld [vmem:[#allocation5 + $0x64] ss:$16 sps:$4 sm:$0xff]  }
  0x6f   : > { %v1268_v14 = vld [vmem:[#allocation5 + $0x6c] ss:$16 sps:$4 sm:$0xff]   ;;  %v1270_v15 = vld [vmem:[#allocation5 + $0x60] ss:$16 sps:$4 sm:$0xff]   ;;  %v1271_v16 = vld [vmem:[#allocation5 + $0x68] ss:$16 sps:$4 sm:$0xff]  }
  0x70   : > { %v270_v17 = vld [vmem:[%s1738_s23] sm:$0xff]  ;;  %v1274_v18 = vld [vmem:[#allocation7 + $0x4] ss:$8 sps:$4 sm:$0xff]   ;;  %v1272_v21 = vld [vmem:[#allocation7] ss:$8 sps:$4 sm:$0xff]   ;;  %s1083_s12 = sshll.u32 %s1734_s14, 4 }
  0x71   : > { %397 = vmatpush1.bf16.msra.mxu0 %v1258_v7  ;;  %438 = vmatpush1.bf16.msra.mxu1 %v1259_v8  ;;  %v1277_v19 = vld [vmem:[#allocation7 + $0x104] ss:$8 sps:$4 sm:$0xff]   ;;  %v271_v20 = vpack.c.bf16 %v270_v17, %v270_v17  ;;  %v1275_v22 = vld [vmem:[#allocation7 + $0x100] ss:$8 sps:$4 sm:$0xff]   ;;  %v1280_v23 = vld [vmem:[#allocation7 + $0x14] ss:$8 sps:$4 sm:$0xff]  }
  0x72   : > { %398 = vmatprep.subr.bf16.mxu0 %v1260_v9  ;;  %439 = vmatprep.subr.bf16.mxu1 %v1262_v10  ;;  %v1283_v24 = vld [vmem:[#allocation7 + $0x114] ss:$8 sps:$4 sm:$0xff]   ;;  %v1278_v25 = vld [vmem:[#allocation7 + $0x10] ss:$8 sps:$4 sm:$0xff]   ;;  %v1286_v27 = vld [vmem:[#allocation7 + $0x24] ss:$8 sps:$4 sm:$0xff]  }
  0x73   : > { %v1281_v26 = vld [vmem:[#allocation7 + $0x110] ss:$8 sps:$4 sm:$0xff]   ;;  %v1289_v28 = vld [vmem:[#allocation7 + $0x124] ss:$8 sps:$4 sm:$0xff]   ;;  %v1284_v29 = vld [vmem:[#allocation7 + $0x20] ss:$8 sps:$4 sm:$0xff]  }
  0x74   : > { %v1287_v30 = vld [vmem:[#allocation7 + $0x120] ss:$8 sps:$4 sm:$0xff]   ;;  %v1292_v31 = vld [vmem:[#allocation7 + $0x34] ss:$8 sps:$4 sm:$0xff]   ;;  %v1290_v33 = vld [vmem:[#allocation7 + $0x30] ss:$8 sps:$4 sm:$0xff]  }
  0x75   : > { %399 = vmatpush1.bf16.msra.mxu0 %v1264_v11  ;;  %440 = vmatpush1.bf16.msra.mxu1 %v1265_v12  ;;  %v1295_v32 = vld [vmem:[#allocation7 + $0x134] ss:$8 sps:$4 sm:$0xff]   ;;  %v1293_v34 = vld [vmem:[#allocation7 + $0x130] ss:$8 sps:$4 sm:$0xff]   ;;  %v1298_v35 = vld [vmem:[#allocation7 + $0x44] ss:$8 sps:$4 sm:$0xff]  }
  0x76   : > { %400 = vmatprep.subr.bf16.mxu0 %v1266_v13  ;;  %441 = vmatprep.subr.bf16.mxu1 %v1268_v14  ;;  %v1301_v36 = vld [vmem:[#allocation7 + $0x144] ss:$8 sps:$4 sm:$0xff]   ;;  %v1296_v37 = vld [vmem:[#allocation7 + $0x40] ss:$8 sps:$4 sm:$0xff]   ;;  %v1304_v39 = vld [vmem:[#allocation7 + $0x54] ss:$8 sps:$4 sm:$0xff]  }
  0x77   : > { %v1299_v38 = vld [vmem:[#allocation7 + $0x140] ss:$8 sps:$4 sm:$0xff]   ;;  %v1307_v40 = vld [vmem:[#allocation7 + $0x154] ss:$8 sps:$4 sm:$0xff]   ;;  %v1302_v41 = vld [vmem:[#allocation7 + $0x50] ss:$8 sps:$4 sm:$0xff]  }
  0x78   : > { %v1305_v42 = vld [vmem:[#allocation7 + $0x150] ss:$8 sps:$4 sm:$0xff]   ;;  %v1310_v43 = vld [vmem:[#allocation7 + $0x64] ss:$8 sps:$4 sm:$0xff]   ;;  %v1308_v45 = vld [vmem:[#allocation7 + $0x60] ss:$8 sps:$4 sm:$0xff]  }
  0x79   : > { %401 = vmatpush1.bf16.msra.mxu0 %v1270_v15  ;;  %442 = vmatpush1.bf16.msra.mxu1 %v1271_v16  ;;  %v1313_v44 = vld [vmem:[#allocation7 + $0x164] ss:$8 sps:$4 sm:$0xff]   ;;  %v1311_v46 = vld [vmem:[#allocation7 + $0x160] ss:$8 sps:$4 sm:$0xff]   ;;  %v1316_v47 = vld [vmem:[#allocation7 + $0x74] ss:$8 sps:$4 sm:$0xff]  }
  0x7a   : > { %884 = vmatprep.subr.bf16.mxu1 %v1274_v18  ;;  %925 = vmatprep.subr.bf16.mxu0 %v1277_v19  ;;  %v1319_v48 = vld [vmem:[#allocation7 + $0x174] ss:$8 sps:$4 sm:$0xff]   ;;  %v1314_v49 = vld [vmem:[#allocation7 + $0x70] ss:$8 sps:$4 sm:$0xff]   ;;  %v1322_v51 = vld [vmem:[#allocation7 + $0x84] ss:$8 sps:$4 sm:$0xff]   ;;  %v290_v19 = vlaneseq }
  0x7b   : > { %v1317_v50 = vld [vmem:[#allocation7 + $0x170] ss:$8 sps:$4 sm:$0xff]   ;;  %v1325_v52 = vld [vmem:[#allocation7 + $0x184] ss:$8 sps:$4 sm:$0xff]   ;;  %v1320_v53 = vld [vmem:[#allocation7 + $0x80] ss:$8 sps:$4 sm:$0xff]  }
  0x7c   : > { %1100 = vmatmul.mubr.msk.bf16.vlgmr.msra.gmra.mrb[0].mxu0 %vm390_vm0, %v271_v20  ;;  %1101 = vmatmul.mubr.msk.bf16.vlgmr.msra.gmra.mrb[0].mxu1 %vm390_vm0, %v271_v20  ;;  %v1323_v54 = vld [vmem:[#allocation7 + $0x180] ss:$8 sps:$4 sm:$0xff]   ;;  %v1328_v55 = vld [vmem:[#allocation7 + $0x94] ss:$8 sps:$4 sm:$0xff]   ;;  %v1326_v57 = vld [vmem:[#allocation7 + $0x90] ss:$8 sps:$4 sm:$0xff]  }
  0x7d   : > { %885 = vmatpush1.bf16.msra.mxu1 %v1272_v21  ;;  %926 = vmatpush1.bf16.msra.mxu0 %v1275_v22  ;;  %v1331_v56 = vld [vmem:[#allocation7 + $0x194] ss:$8 sps:$4 sm:$0xff]   ;;  %v1329_v58 = vld [vmem:[#allocation7 + $0x190] ss:$8 sps:$4 sm:$0xff]   ;;  %v1334_v59 = vld [vmem:[#allocation7 + $0xa4] ss:$8 sps:$4 sm:$0xff]  }
  0x7e   : > { %886 = vmatprep.subr.bf16.mxu1 %v1280_v23  ;;  %927 = vmatprep.subr.bf16.mxu0 %v1283_v24  ;;  %v1337_v60 = vld [vmem:[#allocation7 + $0x1a4] ss:$8 sps:$4 sm:$0xff]   ;;  %v1332_v61 = vld [vmem:[#allocation7 + $0xa0] ss:$8 sps:$4 sm:$0xff]   ;;  %v1340_v63 = vld [vmem:[#allocation7 + $0xb4] ss:$8 sps:$4 sm:$0xff]  }
  0x7f   : > { %v1335_v62 = vld [vmem:[#allocation7 + $0x1a0] ss:$8 sps:$4 sm:$0xff]   ;;  %v1343_v0 = vld [vmem:[#allocation7 + $0x1b4] ss:$8 sps:$4 sm:$0xff]   ;;  %v1338_v1 = vld [vmem:[#allocation7 + $0xb0] ss:$8 sps:$4 sm:$0xff]  }
  0x80   : > { %v1341_v2 = vld [vmem:[#allocation7 + $0x1b0] ss:$8 sps:$4 sm:$0xff]   ;;  %v1346_v3 = vld [vmem:[#allocation7 + $0xc4] ss:$8 sps:$4 sm:$0xff]   ;;  %v1344_v5 = vld [vmem:[#allocation7 + $0xc0] ss:$8 sps:$4 sm:$0xff]  }
  0x81   : > { %887 = vmatpush1.bf16.msra.mxu1 %v1278_v25  ;;  %928 = vmatpush1.bf16.msra.mxu0 %v1281_v26  ;;  %v1349_v4 = vld [vmem:[#allocation7 + $0x1c4] ss:$8 sps:$4 sm:$0xff]   ;;  %v1347_v6 = vld [vmem:[#allocation7 + $0x1c0] ss:$8 sps:$4 sm:$0xff]   ;;  %v1352_v7 = vld [vmem:[#allocation7 + $0xd4] ss:$8 sps:$4 sm:$0xff]  }
  0x82   : > { %888 = vmatprep.subr.bf16.mxu1 %v1286_v27  ;;  %929 = vmatprep.subr.bf16.mxu0 %v1289_v28  ;;  %v1355_v8 = vld [vmem:[#allocation7 + $0x1d4] ss:$8 sps:$4 sm:$0xff]   ;;  %v1350_v9 = vld [vmem:[#allocation7 + $0xd0] ss:$8 sps:$4 sm:$0xff]   ;;  %v1358_v11 = vld [vmem:[#allocation7 + $0xe4] ss:$8 sps:$4 sm:$0xff]  }
  0x83   : > { %v1353_v10 = vld [vmem:[#allocation7 + $0x1d0] ss:$8 sps:$4 sm:$0xff]   ;;  %v1361_v12 = vld [vmem:[#allocation7 + $0x1e4] ss:$8 sps:$4 sm:$0xff]   ;;  %v1356_v13 = vld [vmem:[#allocation7 + $0xe0] ss:$8 sps:$4 sm:$0xff]  }
  0x84   : > { %v1359_v14 = vld [vmem:[#allocation7 + $0x1e0] ss:$8 sps:$4 sm:$0xff]   ;;  %v1364_v15 = vld [vmem:[#allocation7 + $0xf4] ss:$8 sps:$4 sm:$0xff]   ;;  %v1362_v17 = vld [vmem:[#allocation7 + $0xf0] ss:$8 sps:$4 sm:$0xff]  }
  0x85   : > { %889 = vmatpush1.bf16.msra.mxu1 %v1284_v29  ;;  %930 = vmatpush1.bf16.msra.mxu0 %v1287_v30  ;;  %v1367_v16 = vld [vmem:[#allocation7 + $0x1f4] ss:$8 sps:$4 sm:$0xff]   ;;  %v1365_v18 = vld [vmem:[#allocation7 + $0x1f0] ss:$8 sps:$4 sm:$0xff]   ;;  %v291_v20 = vshrl.u32 %v290_v19, 7  ;;  %s1171_s13 = sshll.u32 %s1586_s22, 8 }
  0x86   : > { %890 = vmatprep.subr.bf16.mxu1 %v1292_v31  ;;  %931 = vmatprep.subr.bf16.mxu0 %v1295_v32  ;;  %v288_v23 = vld [vmem:[%s1806_s2] sm:$0xf]  ;;  %s268_s7 = scalar_lea.vmem [#allocation8], %s1083_s12  ;;  %s1760_s9 = scalar_lea.hbm %s1809_s5, %s1171_s13 }
  0x87   : > { %v292_v21 = vsub.s32 0, %v291_v20  ;;  %v300_v22 = vsub.s32 2, %v291_v20  ;;  %v296_v24 = vsub.s32 1, %v291_v20  ;;  %v304_v25 = vsub.s32 3, %v291_v20  ;;  %s983_s6 = sshll.u32 %s268_s7, 4  ;;  %s969_s22 = scalar_lea.sflag [#allocation4], %s1734_s14  ;;  %s1762_s6 = int_to_ptr.vmem [resolvable:$true] %s983_s6 }
  0x88   : > { %s1454_s11 = scalar_lea.vmem %s1762_s6, 256  ;;  %p1823_p0 = scmp.ne.s32.totalorder %s1818_s30, 0 }
  0x89   : > { %891 = vmatpush1.bf16.msra.mxu1 %v1290_v33  ;;  %932 = vmatpush1.bf16.msra.mxu0 %v1293_v34  ;;  %v293_v26 = vrot.slane %v288_v23, %v292_v21  ;;  %v301_v27 = vrot.slane %v288_v23, %v300_v22  ;;  %v297_v28 = vrot.slane %v288_v23, %v296_v24  ;;  %p1455_p11 = scmp.ne.s32.totalorder %s1762_s6, %s1454_s11  ;;  %s1534_s15 = smov [#allocation8]  }
  0x8a   : > { %892 = vmatprep.subr.bf16.mxu1 %v1298_v35  ;;  %933 = vmatprep.subr.bf16.mxu0 %v1301_v36  ;;  %v305_v29 = vrot.slane %v288_v23, %v304_v25  ;;  %s1458_s17 = sshll.u32 %s1534_s15, 4  ;;  %s1459_s17 = int_to_ptr.vmem [resolvable:$false] %s1458_s17 }
  0x8b   : > { %p1456_p1 = pnand %p1455_p11, %p1823_p0  ;;  %s1460_s23 = scalar_lea.vmem %s1459_s17, 512 }
  0x8c   : > { %p1461_p5 = scmp.lt.s32.totalorder %s1762_s6, %s1459_s17  ;;  %p1462_p9 = scmp.lt.s32.totalorder %s1460_s23, %s1454_s11 }
  0x8d   : > { %893 = vmatpush1.bf16.msra.mxu1 %v1296_v37  ;;  %934 = vmatpush1.bf16.msra.mxu0 %v1299_v38  ;;  %p1457_p3 = pneg %p1456_p1 }
  0x8e   : > { %894 = vmatprep.subr.bf16.mxu1 %v1304_v39  ;;  %935 = vmatprep.subr.bf16.mxu0 %v1307_v40  ;;  %p1463_p12 = por %p1462_p9, %p1461_p5 }
  0x90   : > { %p1464_p2 = pnand %p1463_p12, %p1457_p3 }
  0x91   : > { %895 = vmatpush1.bf16.msra.mxu1 %v1302_v41  ;;  %936 = vmatpush1.bf16.msra.mxu0 %v1305_v42 }
  0x92   : > { %896 = vmatprep.subr.bf16.mxu1 %v1310_v43  ;;  %937 = vmatprep.subr.bf16.mxu0 %v1313_v44 }
  0x95   : > { %897 = vmatpush1.bf16.msra.mxu1 %v1308_v45  ;;  %938 = vmatpush1.bf16.msra.mxu0 %v1311_v46 }
  0x96   : > { %898 = vmatprep.subr.bf16.mxu1 %v1316_v47  ;;  %939 = vmatprep.subr.bf16.mxu0 %v1319_v48 }
  0x99   : > { %899 = vmatpush1.bf16.msra.mxu1 %v1314_v49  ;;  %940 = vmatpush1.bf16.msra.mxu0 %v1317_v50 }
  0x9a   : > { %900 = vmatprep.subr.bf16.mxu1 %v1322_v51  ;;  %941 = vmatprep.subr.bf16.mxu0 %v1325_v52 }
  0x9d   : > { %901 = vmatpush1.bf16.msra.mxu1 %v1320_v53  ;;  %942 = vmatpush1.bf16.msra.mxu0 %v1323_v54  ;;  %v552_v54 = vld [vmem:[%s1808_s4] sm:$0x3] }
  0x9e   : > { %902 = vmatprep.subr.bf16.mxu1 %v1328_v55  ;;  %943 = vmatprep.subr.bf16.mxu0 %v1331_v56  ;;  %v557_v55 = vrot.slane %v552_v54, %v292_v21  ;;  %v561_v56 = vrot.slane %v552_v54, %v296_v24 }
  0xa1   : > { %903 = vmatpush1.bf16.msra.mxu1 %v1326_v57  ;;  %944 = vmatpush1.bf16.msra.mxu0 %v1329_v58 }
  0xa2   : > { %904 = vmatprep.subr.bf16.mxu1 %v1334_v59  ;;  %945 = vmatprep.subr.bf16.mxu0 %v1337_v60 }
  0xa5   : > { %905 = vmatpush1.bf16.msra.mxu1 %v1332_v61  ;;  %946 = vmatpush1.bf16.msra.mxu0 %v1335_v62 }
  0xa6   : > { %906 = vmatprep.subr.bf16.mxu1 %v1340_v63  ;;  %947 = vmatprep.subr.bf16.mxu0 %v1343_v0 }
  0xa9   : > { %907 = vmatpush1.bf16.msra.mxu1 %v1338_v1  ;;  %948 = vmatpush1.bf16.msra.mxu0 %v1341_v2 }
  0xaa   : > { %908 = vmatprep.subr.bf16.mxu1 %v1346_v3  ;;  %949 = vmatprep.subr.bf16.mxu0 %v1349_v4 }
  0xad   : > { %909 = vmatpush1.bf16.msra.mxu1 %v1344_v5  ;;  %950 = vmatpush1.bf16.msra.mxu0 %v1347_v6 }
  0xae   : > { %910 = vmatprep.subr.bf16.mxu1 %v1352_v7  ;;  %951 = vmatprep.subr.bf16.mxu0 %v1355_v8 }
  0xb1   : > { %911 = vmatpush1.bf16.msra.mxu1 %v1350_v9  ;;  %952 = vmatpush1.bf16.msra.mxu0 %v1353_v10 }
  0xb2   : > { %912 = vmatprep.subr.bf16.mxu1 %v1358_v11  ;;  %953 = vmatprep.subr.bf16.mxu0 %v1361_v12 }
  0xb5   : > { %913 = vmatpush1.bf16.msra.mxu1 %v1356_v13  ;;  %954 = vmatpush1.bf16.msra.mxu0 %v1359_v14 }
  0xb6   : > { %914 = vmatprep.subr.bf16.mxu1 %v1364_v15  ;;  %955 = vmatprep.subr.bf16.mxu0 %v1367_v16 }
  0xb9   : > { %915 = vmatpush1.bf16.msra.mxu1 %v1362_v17  ;;  %956 = vmatpush1.bf16.msra.mxu0 %v1365_v18 }
 0x14f   : > { %v428_v30 = vpop.f32.mrb[0].mxu0  ;;  %v469_v31 = vpop.f32.mrb[0].mxu1 }
 0x150   : > { %v429_v32 = vadd.f32 %v428_v30, %v293_v26  ;;  %v470_v33 = vadd.f32 %v469_v31, %v301_v27  ;;  %v430_v34 = vpop.f32.mrb[1].mxu0  ;;  %v471_v35 = vpop.f32.mrb[1].mxu1 }
 0x151   : > { %v431_v36 = vadd.f32 %v430_v34, %v297_v28  ;;  %v472_v37 = vadd.f32 %v471_v35, %v305_v29  ;;  %v432_v38 = vpop.f32.mrb[2].mxu0  ;;  %v473_v39 = vpop.f32.mrb[2].mxu1 }
 0x152   : > { %v476_v40 = vmul.f32 0.1, %v429_v32  ;;  %v478_v41 = vmul.f32 0.1, %v470_v33  ;;  %v433_v42 = vpop.f32.mrb[3].mxu0  ;;  %v474_v43 = vpop.f32.mrb[3].mxu1 }
 0x153   : > { %v477_v44 = vmul.f32 0.1, %v431_v36  ;;  %v479_v45 = vmul.f32 0.1, %v472_v37 }
 0x154   : > { %v480_v46 = vmax.f32 %v429_v32, %v476_v40  ;;  %v482_v47 = vmax.f32 %v470_v33, %v478_v41 }
 0x155   : > { %v481_v48 = vmax.f32 %v431_v36, %v477_v44  ;;  %v483_v49 = vmax.f32 %v472_v37, %v479_v45 }
 0x156   : > { %v484_v52 = vpack.c.bf16 %v480_v46, %v480_v46  ;;  %v486_v53 = vpack.c.bf16 %v482_v47, %v482_v47 }
 0x157   : > { %v485_v50 = vpack.c.bf16 %v481_v48, %v481_v48  ;;  %v487_v51 = vpack.c.bf16 %v483_v49, %v483_v49 }
 0x159   : > { %916 = vmatprep.mubr.bf16.mxu1 %v485_v50  ;;  %957 = vmatprep.mubr.bf16.mxu0 %v487_v51 }
 0x15a   : > { %917 = vmatmul.mubr.bf16.vlgmr.msra.gmra.mrb[4].mxu1 %v484_v52  ;;  %958 = vmatmul.mubr.bf16.vlgmr.msra.gmra.mrb[4].mxu0 %v486_v53 }
 0x22d   : > { %v918_v57 = vpop.f32.mrb[4].mxu1  ;;  %v959_v58 = vpop.f32.mrb[4].mxu0 }
 0x22e   : > { %v919_v59 = vadd.f32 %v918_v57, %v557_v55  ;;  %v920_v60 = vpop.f32.mrb[5].mxu1  ;;  %v961_v61 = vpop.f32.mrb[5].mxu0 }
 0x22f   : > { %v921_v62 = vadd.f32 %v920_v60, %v561_v56  ;;  %v922_v63 = vpop.f32.mrb[6].mxu1  ;;  %v963_v0 = vpop.f32.mrb[6].mxu0 }
 0x230   : > { %v960_v1 = vadd.f32 %v959_v58, %v919_v59  ;;  %v923_v2 = vpop.f32.mrb[7].mxu1  ;;  %v964_v3 = vpop.f32.mrb[7].mxu0 }
 0x231   : > { %v962_v4 = vadd.f32 %v961_v61, %v921_v62 }
 0x232   : > { %966 = vst [vmem:[%s268_s7] sm:$0xff] %v960_v1 }
 0x233   : > { %967 = vst [vmem:[%s268_s7 + $0x8] sm:$0xff] %v962_v4 }
 0x234   : > { %1467 = shalt.err (!%p1464_p2)
}
 0x235   : > { %s1468_s14 = scalar_lea.hbm %s1760_s9, 256  ;;  %s1472_s10 = scalar_lea.hbm %s1809_s5, 512 }
 0x236   : > { %p1469_p13 = scmp.ne.s32.totalorder %s1760_s9, %s1468_s14  ;;  %p1473_p4 = scmp.lt.u32.totalorder %s1760_s9, %s1809_s5 }
 0x237   : > { %p1474_p7 = scmp.lt.u32.totalorder %s1472_s10, %s1468_s14  ;;  %p1476_p11 = scmp.lt.u32.totalorder %s1468_s14, %s1760_s9 }
 0x238   : > { %p1470_p6 = pnand %p1469_p13, %p1823_p0 }
 0x239   : > { %p1475_p8 = por %p1474_p7, %p1473_p4 }
 0x23a   : > { %p1471_p10 = pneg %p1470_p6 }
 0x23b   : > { %p1477_p1 = por %p1476_p11, %p1475_p8 }
 0x23d   : > { %p1478_p3 = pnand %p1477_p1, %p1471_p10 }
 0x23f   : > { %1481 = shalt.err (!%p1478_p3)
}
 0x240   : > { %1186 = dma.vmem_to_hbm [thread:$0]  (%p1823_p0), %s1762_s6, 256, %s1760_s9, %s969_s22  }
 0x241 PF: > { %s995_s13 = sand.u32 1, %s1512_s18   ;;  %p1824_p5 = scmp.ne.s32.totalorder %s1814_s25, 0 }
 0x242   : > { %p1825_p9 = scmp.ge.s32.totalorder %s1524_s21, 2  ;;  %s996_s7 = scalar_lea.sflag [#allocation4], %s995_s13 }
 0x244   : > { %p1200_p12 = pnand %p1825_p9, %p1824_p5 }
 0x246   : > { %1507 = dma.done.wait (!%p1200_p12), %s996_s7, 256  }
 0x247   : > { %1509 = vsyncadd (!%p1200_p12), %s996_s7, 4294967040  ;;  %p19_p2 = scmp.ge.s32.totalorder %s1675_s16, 4   ;;  %s1826_s18 = smov %s1516_s19 }
 0x248   : > { %s1827_s19 = smov %s1520_s20  ;;  %s1828_s20 = smov %s1684_s27 }
 0x249   : > { %s1829_s21 = smov %s1675_s16  ;;  %21 = sbr.rel (!%p19_p2) target bundleno = 6 (0x6), region = 93 }
 0x250   :  { %1001 = vsyncpa [#allocation3], 1 }
 0x251   :  { %1003 = vsyncpa [#allocation3 + $0x1], 1 }
 0x252   :  { %1004 = vsyncpa [#allocation6], 1 }
 0x253   :  { %1005 = vsyncpa [#allocation4], 1 }
 0x254   :  { %1007 = vsyncpa [#allocation4 + $0x1], 1 }

</bundles_post_ra>
